<compile_context>
chip_gen: v6e
topology: v6e:2x2x1
jax: 0.10.0
libtpu: 0.0.40
codegen_flags: <defaults>
</compile_context>

<pallas_src>
import math

import jax
import jax.numpy as jnp
from jax.experimental import pallas as pl
from jax.experimental.pallas import tpu as pltpu


# dot_general dimension numbers: contract the LAST dim of both operands
# (i.e. x @ W^T with W stored as (out, in)); the MXU handles the transposed rhs.
_CONTRACT_LAST = (((1,), (1,)), ((), ()))


def _lora_linear_kernel(x_ref, w_ref, bias_ref, down_ref, up_w_ref, o_ref,
                        acc_ref):
    """One (tm, tk) x-tile against a (tn, tk) W-tile; K is the reduction axis.

    down_ref holds the pre-scaled LoRA down-projection (tm, r).  The LoRA
    up-projection + bias + cast + store happen once per output tile, gated on
    the final K step.
    """
    k = pl.program_id(2)

    @pl.when(k == 0)
    def _init():
        acc_ref[...] = jnp.zeros_like(acc_ref)

    # Base linear partial sum: x @ W^T  (W tile is (tn, tk), native layout).
    acc_ref[...] += jax.lax.dot_general(
        x_ref[...], w_ref[...], _CONTRACT_LAST,
        preferred_element_type=jnp.float32)

    @pl.when(k == pl.num_programs(2) - 1)
    def _epilogue():
        # LoRA up-projection on the rank-r intermediate: (tm, r) @ (tn, r)^T.
        up = jax.lax.dot_general(
            down_ref[...], up_w_ref[...], _CONTRACT_LAST,
            preferred_element_type=jnp.float32)
        out = acc_ref[...] + bias_ref[...] + up
        o_ref[...] = out.astype(o_ref.dtype)


def _choose_tile(dim, preferred, align):
    """Pick a tile for `dim` and the (possibly padded) extent it divides.

    Returns (tile, padded_dim).  Small dims use a full-dimension block (always
    legal); otherwise the largest `align`-multiple divisor <= preferred; if no
    such divisor exists the dim is padded up to a multiple of the preferred
    aligned tile — never a full-dimension block that could exceed VMEM.
    """
    if dim <= preferred:
        return dim, dim
    t = (preferred // align) * align
    while t >= align:
        if dim % t == 0:
            return t, dim
        t -= align
    t = (preferred // align) * align
    padded = ((dim + t - 1) // t) * t
    return t, padded


def _pad_axis(a, axis, target):
    pad = target - a.shape[axis]
    if pad <= 0:
        return a
    widths = [(0, 0)] * a.ndim
    widths[axis] = (0, pad)
    return jnp.pad(a, widths)


def _vmem_cap_bytes():
    """Generation-aware scoped-VMEM ceiling: ~85% of physical VMEM, leaving
    headroom for Mosaic internal scratch (~54 MiB on v7x, ~108 MiB on v5e/v6e).
    """
    default = 64 << 20
    try:  # narrow guard around the hardware query only (never retraces)
        cap = int(pltpu.get_tpu_info().vmem_capacity_bytes)
    except Exception:
        cap = default
    return int(cap * 0.85)


def lora_linear(x2d, W, bias2d, down2d, B, *,
                tm_pref=512, tn_pref=512, tk_pref=1024):
    """Fused  x @ W^T + bias + down @ B^T  on the MXU.

    x2d:    (M, K)  activations
    W:      (N, K)  linear.weight (native PyTorch layout, no transpose)
    bias2d: (1, N)  linear.bias
    down2d: (M, R)  pre-scaled LoRA down-projection  scale * (x @ A^T)
    B:      (N, R)  lora_up.weight (native layout)
    """
    M, K = x2d.shape
    N = W.shape[0]
    R = down2d.shape[1]
    isz = x2d.dtype.itemsize

    tm, pM = _choose_tile(M, tm_pref, 128)
    tn, pN = _choose_tile(N, tn_pref, 128)
    tk, pK = _choose_tile(K, tk_pref, 128)

    # v7x has two TensorCores: avoid a 1x1 output-tile grid when the halves
    # still satisfy the (8, 128) block constraints (no-op on v5e/v6e).
    if (pM // tm) * (pN // tn) == 1:
        if tn >= 256 and (tn // 2) % 128 == 0:
            tn //= 2
        elif tm >= 16 and (tm // 2) % 8 == 0:
            tm //= 2

    nm, nn, nk = pM // tm, pN // tn, pK // tk
    grid = (nm, nn, nk)  # reduction axis last

    # Zero-pad to tile multiples (exact for the matmul; padded rows/cols are
    # sliced off below).
    x_p = _pad_axis(_pad_axis(x2d, 0, pM), 1, pK)
    w_p = _pad_axis(_pad_axis(W, 0, pN), 1, pK)
    bias_p = _pad_axis(bias2d, 1, pN)
    down_p = _pad_axis(down2d, 0, pM)
    b_p = _pad_axis(B, 0, pN)

    in_specs = [
        pl.BlockSpec((tm, tk), lambda i, j, k: (i, k)),   # x      (M, K)
        pl.BlockSpec((tn, tk), lambda i, j, k: (j, k)),   # W      (N, K)
        pl.BlockSpec((1, tn), lambda i, j, k: (0, j)),    # bias   (1, N)
        pl.BlockSpec((tm, R), lambda i, j, k: (i, 0)),    # down   (M, R)
        pl.BlockSpec((tn, R), lambda i, j, k: (j, 0)),    # B      (N, R)
    ]
    out_spec = pl.BlockSpec((tm, tn), lambda i, j, k: (i, j))

    # Scoped-VMEM budget from the actual (double-buffered) tile footprints.
    vmem_bytes = (
        2 * tm * tk * isz          # x
        + 2 * tn * tk * isz        # W
        + 2 * tn * isz             # bias
        + 2 * tm * R * isz         # down
        + 2 * tn * R * isz         # B
        + 2 * tm * tn * isz        # output
        + tm * tn * 4              # f32 accumulator scratch
    )
    vmem_limit = min(_vmem_cap_bytes(), max(32 << 20, int(1.5 * vmem_bytes)))

    # Advisory cost: x is re-streamed once per N tile, W once per M tile.
    cost = pl.CostEstimate(
        flops=2 * pM * pN * pK + 2 * pM * R * pN,
        transcendentals=0,
        bytes_accessed=(nn * pM * pK * isz + nm * pN * pK * isz
                        + nm * pN * isz + nn * pM * R * isz
                        + nm * pN * R * isz + pM * pN * isz),
    )

    out_p = pl.pallas_call(
        _lora_linear_kernel,
        out_shape=jax.ShapeDtypeStruct((pM, pN), x2d.dtype),
        grid_spec=pltpu.PrefetchScalarGridSpec(
            num_scalar_prefetch=0,
            grid=grid,
            in_specs=in_specs,
            out_specs=out_spec,
            scratch_shapes=[pltpu.VMEM((tm, tn), jnp.float32)],
        ),
        compiler_params=pltpu.CompilerParams(
            dimension_semantics=("parallel", "parallel", "arbitrary"),
            vmem_limit_bytes=vmem_limit,
        ),
        cost_estimate=cost,
    )(x_p, w_p, bias_p, down_p, b_p)

    return out_p[:M, :N]


def lora_wrapper_forward(x, W, b, A, B, *, scale):
    """PyTorch-semantics forward of LoRAWrapper.

    x: (..., in_features)
    W: (out_features, in_features)   -- linear.weight (native layout, no .T)
    b: (out_features,)               -- linear.bias
    A: (r, in_features)              -- lora_down.weight
    B: (out_features, r)             -- lora_up.weight
    """
    lead = x.shape[:-1]
    K = x.shape[-1]
    x2d = x.reshape(-1, K)
    # Hoisted rank-r down-projection (perf review): tiny (M,K)x(K,r) matmul
    # done once here instead of wasting a full MXU pass per K step and being
    # recomputed per N tile inside the kernel.  The LoRA scale is applied on
    # the rank-r intermediate (cheapest place).
    down = scale * jnp.dot(x2d, A.T, preferred_element_type=jnp.float32)
    down = down.astype(x2d.dtype)
    out2d = lora_linear(x2d, W, b.reshape(1, -1), down, B)
    return out2d.reshape(*lead, W.shape[0])


if __name__ == "__main__":
    # Small shapes consistent with wrapping a linear layer inside a transformer.
    batch, seq = 2, 8
    in_features, out_features = 32, 32
    rank, scale, num_packed_linear = 4, 1.25, 1

    key = jax.random.PRNGKey(0)
    kx, kw, kb, kd, ku = jax.random.split(key, 5)

    x = jax.random.normal(kx, (batch, seq, in_features), dtype=jnp.float32)

    # Base linear parameters (nn.Linear default: uniform(-1/sqrt(K), 1/sqrt(K))).
    bound = 1.0 / math.sqrt(in_features)
    W = jax.random.uniform(kw, (out_features, in_features),
                           minval=-bound, maxval=bound, dtype=jnp.float32)
    b = jax.random.uniform(kb, (out_features,),
                           minval=-bound, maxval=bound, dtype=jnp.float32)

    # LoRA parameters: lora_down ~ N(0, 1/rank).  The module zero-inits
    # lora_up (LoRA path is a no-op at init); use small random values instead
    # so the fused low-rank path in the kernel is actually exercised.
    A = (1.0 / rank) * jax.random.normal(
        kd, (num_packed_linear * rank, in_features), dtype=jnp.float32)
    B = 0.01 * jax.random.normal(
        ku, (out_features, num_packed_linear * rank), dtype=jnp.float32)

    out = lora_wrapper_forward(x, W, b, A, B, scale=scale)
    out = jax.block_until_ready(out)

    # Pure-JAX reference of the PyTorch forward semantics.
    ref = x @ W.T + b + scale * ((x @ A.T) @ B.T)
    assert out.shape == (batch, seq, out_features)
    assert jnp.allclose(out, ref, atol=1e-5, rtol=1e-5), "mismatch vs reference"

    print("KERNEL_OK")
</pallas_src>

<mosaic_0001>
module attributes {stable_mosaic.version = 11 : i64} {
  func.func @_lora_linear_kernel(%arg0: i32, %arg1: i32, %arg2: i32, %arg3: memref<8x32xf32, #tpu.memory_space<vmem>>, %arg4: memref<32x32xf32, #tpu.memory_space<vmem>>, %arg5: memref<1x32xf32, #tpu.memory_space<vmem>>, %arg6: memref<8x4xf32, #tpu.memory_space<vmem>>, %arg7: memref<32x4xf32, #tpu.memory_space<vmem>>, %arg8: memref<8x32xf32, #tpu.memory_space<vmem>>, %arg9: memref<8x32xf32, #tpu.memory_space<vmem>>) attributes {dimension_semantics = [#tpu.dimension_semantics<parallel>, #tpu.dimension_semantics<parallel>, #tpu.dimension_semantics<arbitrary>], iteration_bounds = array<i64: 2, 1, 1>, scalar_prefetch = 0 : i64, scratch_operands = 1 : i64, tpu.core_type = #tpu.core_type<tc>, window_params = [{transform_indices = @transform_0, window_bounds = array<i64: 8, 32>}, {transform_indices = @transform_1, window_bounds = array<i64: 32, 32>}, {transform_indices = @transform_2, window_bounds = array<i64: 1, 32>}, {transform_indices = @transform_3, window_bounds = array<i64: 8, 4>}, {transform_indices = @transform_4, window_bounds = array<i64: 32, 4>}, {transform_indices = @transform_5, window_bounds = array<i64: 8, 32>}]} {
    %c0_i32 = arith.constant 0 : i32
    %0 = arith.cmpi eq, %arg2, %c0_i32 : i32
    %1 = arith.extui %0 : i1 to i32
    %c0_i32_0 = arith.constant 0 : i32
    %2 = arith.cmpi ne, %1, %c0_i32_0 : i32
    scf.if %2 {
      %cst_10 = arith.constant 0.000000e+00 : f32
      %12 = vector.broadcast %cst_10 : f32 to vector<8x32xf32>
      %c0_11 = arith.constant 0 : index
      %c0_12 = arith.constant 0 : index
      %13 = vector.load %arg9[%c0_11, %c0_12] : memref<8x32xf32, #tpu.memory_space<vmem>>, vector<8x32xf32>
      tpu.vector_store %arg9[%c0_11, %c0_12], %12 {strides = array<i32>} : memref<8x32xf32, #tpu.memory_space<vmem>>, vector<8x32xf32>,
    } else {
    }
    %c0 = arith.constant 0 : index
    %c0_1 = arith.constant 0 : index
    %3 = vector.load %arg9[%c0, %c0_1] : memref<8x32xf32, #tpu.memory_space<vmem>>, vector<8x32xf32>
    %c0_2 = arith.constant 0 : index
    %c0_3 = arith.constant 0 : index
    %4 = vector.load %arg3[%c0_2, %c0_3] : memref<8x32xf32, #tpu.memory_space<vmem>>, vector<8x32xf32>
    %c0_4 = arith.constant 0 : index
    %c0_5 = arith.constant 0 : index
    %5 = vector.load %arg4[%c0_4, %c0_5] : memref<32x32xf32, #tpu.memory_space<vmem>>, vector<32x32xf32>
    %cst = arith.constant dense<0.000000e+00> : vector<8x32xf32>
    %6 = tpu.matmul %4, %5, %cst {dimension_numbers = #tpu.dot_dimension_numbers<[1], [1], [0], [0], [0, 0, 1, 0], [], []>} : vector<8x32xf32>, vector<32x32xf32>, vector<8x32xf32> -> vector<8x32xf32>
    %7 = arith.addf %3, %6 : vector<8x32xf32>
    %c0_6 = arith.constant 0 : index
    %c0_7 = arith.constant 0 : index
    %8 = vector.load %arg9[%c0_6, %c0_7] : memref<8x32xf32, #tpu.memory_space<vmem>>, vector<8x32xf32>
    tpu.vector_store %arg9[%c0_6, %c0_7], %7 {strides = array<i32>} : memref<8x32xf32, #tpu.memory_space<vmem>>, vector<8x32xf32>,
    %c0_i32_8 = arith.constant 0 : i32
    %9 = arith.cmpi eq, %arg2, %c0_i32_8 : i32
    %10 = arith.extui %9 : i1 to i32
    %c0_i32_9 = arith.constant 0 : i32
    %11 = arith.cmpi ne, %10, %c0_i32_9 : i32
    scf.if %11 {
      %c0_10 = arith.constant 0 : index
      %c0_11 = arith.constant 0 : index
      %12 = vector.load %arg6[%c0_10, %c0_11] : memref<8x4xf32, #tpu.memory_space<vmem>>, vector<8x4xf32>
      %c0_12 = arith.constant 0 : index
      %c0_13 = arith.constant 0 : index
      %13 = vector.load %arg7[%c0_12, %c0_13] : memref<32x4xf32, #tpu.memory_space<vmem>>, vector<32x4xf32>
      %cst_14 = arith.constant dense<0.000000e+00> : vector<8x32xf32>
      %14 = tpu.matmul %12, %13, %cst_14 {dimension_numbers = #tpu.dot_dimension_numbers<[1], [1], [0], [0], [0, 0, 1, 0], [], []>} : vector<8x4xf32>, vector<32x4xf32>, vector<8x32xf32> -> vector<8x32xf32>
      %c0_15 = arith.constant 0 : index
      %c0_16 = arith.constant 0 : index
      %15 = vector.load %arg9[%c0_15, %c0_16] : memref<8x32xf32, #tpu.memory_space<vmem>>, vector<8x32xf32>
      %c0_17 = arith.constant 0 : index
      %c0_18 = arith.constant 0 : index
      %16 = vector.load %arg5[%c0_17, %c0_18] : memref<1x32xf32, #tpu.memory_space<vmem>>, vector<1x32xf32>
      %17 = vector.broadcast %16 : vector<1x32xf32> to vector<8x32xf32>
      %18 = arith.addf %15, %17 : vector<8x32xf32>
      %19 = arith.addf %18, %14 : vector<8x32xf32>
      %c0_19 = arith.constant 0 : index
      %c0_20 = arith.constant 0 : index
      %20 = vector.load %arg8[%c0_19, %c0_20] : memref<8x32xf32, #tpu.memory_space<vmem>>, vector<8x32xf32>
      tpu.vector_store %arg8[%c0_19, %c0_20], %19 {strides = array<i32>} : memref<8x32xf32, #tpu.memory_space<vmem>>, vector<8x32xf32>,
    } else {
    }
    return
  }
  func.func @transform_0(%arg0: i32, %arg1: i32, %arg2: i32) -> (i32, i32) {
    %c0_i32 = arith.constant 0 : i32
    return %arg0, %arg2 : i32, i32
  }
  func.func @transform_1(%arg0: i32, %arg1: i32, %arg2: i32) -> (i32, i32) {
    %c0_i32 = arith.constant 0 : i32
    return %arg1, %arg2 : i32, i32
  }
  func.func @transform_2(%arg0: i32, %arg1: i32, %arg2: i32) -> (i32, i32) {
    %c0_i32 = arith.constant 0 : i32
    %c0_i32_0 = arith.constant 0 : i32
    return %c0_i32, %arg1 : i32, i32
  }
  func.func @transform_3(%arg0: i32, %arg1: i32, %arg2: i32) -> (i32, i32) {
    %c0_i32 = arith.constant 0 : i32
    %c0_i32_0 = arith.constant 0 : i32
    return %arg0, %c0_i32 : i32, i32
  }
  func.func @transform_4(%arg0: i32, %arg1: i32, %arg2: i32) -> (i32, i32) {
    %c0_i32 = arith.constant 0 : i32
    %c0_i32_0 = arith.constant 0 : i32
    return %arg1, %c0_i32 : i32, i32
  }
  func.func @transform_5(%arg0: i32, %arg1: i32, %arg2: i32) -> (i32, i32) {
    %c0_i32 = arith.constant 0 : i32
    return %arg0, %arg1 : i32, i32
  }
}

</mosaic_0001>

<bundles_post_ra>
// kernel: tpu_custom_call.1
= control target key start
LH: loop header
LB: loop body
LE: loop exit
PB: predicated region body
PF: predicated region fallthrough
CT: control target
= control target key end

     0   :  { %10 = vsyncpa [#allocation4], 0  ;;  %s1057_s0 = inlined_call_operand.vmem [shape: f32[16,32], index: 0, kind: input, shape index: {}]   ;;  %s1058_s1 = inlined_call_operand.vmem [shape: f32[32,32], index: 1, kind: input, shape index: {}]   ;;  %s1059_s2 = inlined_call_operand.vmem [shape: f32[1,32], index: 2, kind: input, shape index: {}]   ;;  %s1060_s3 = inlined_call_operand.vmem [shape: f32[16,4], index: 3, kind: input, shape index: {}]   ;;  %s1061_s4 = inlined_call_operand.vmem [shape: f32[32,4], index: 4, kind: input, shape index: {}]   ;;  %s1062_s5 = inlined_call_operand.hbm [shape: f32[16,32], index: 5, kind: output, shape index: {}]  }
   0x1   :  { %12 = vsyncpa [#allocation4 + $0x1], 0  ;;  %s915_s18 = smov 0   ;;  %s917_s19 = smov 0  }
   0x2   :  { %s919_s20 = smov 0   ;;  %s921_s21 = smov 0  }
   0x3   :  { %s923_s22 = smov 0   ;;  %s925_s23 = smov 0  }
   0x4 LB: > { %s689_s24 = sadd.s32 4294967295, %s880_s23   ;;  %s690_s25 = sadd.s32 4294967294, %s880_s23   ;;  %s880_s23 = sphi %s925_s23, %s18_s23   ;;  %s876_s22 = sphi %s923_s22, %s1069_s22   ;;  %s872_s21 = sphi %s921_s21, %s1068_s21   ;;  %s868_s20 = sphi %s919_s20, %s1067_s20   ;;  %s864_s19 = sphi %s917_s19, %s1066_s19   ;;  %s860_s18 = sphi %s915_s18, %s1065_s18  }
   0x5   : > { %s37_s26 = sadd.s32 1, %s876_s22  ;;  %s180_s27 = sadd.s32 1, %s868_s20 }
   0x6   : > { %p39_p0 = scmp.ge.s32.totalorder %s37_s26, 2  ;;  %p190_p1 = scmp.ne.s32.totalorder %s868_s20, %s864_s19 }
   0x7   : > { %p191_p2 = scmp.eq.s32.totalorder %s689_s24, 1  ;;  %p196_p3 = scmp.ne.s32.totalorder %s864_s19, %s860_s18 }
   0x8   : > { %s1071_s26 = smov (%p39_p0, %s37_s26), 0  ;;  %p197_p5 = scmp.eq.s32.totalorder %s690_s25, 1 }
   0x9   : > { %p955_p4 = por %p191_p2, %p190_p1  ;;  %s175_s29 = ssub.s32 %s876_s22, %s1071_s26 }
   0xa   : > { %p696_p6 = scmp.ge.s32.totalorder %s880_s23, 1  ;;  %p178_p7 = scmp.eq.s32.totalorder %s175_s29, 0 }
   0xb   : > { %p962_p8 = por %p197_p5, %p196_p3  ;;  %p259_p9 = scmp.lt.s32.totalorder %s880_s23, 3 }
   0xc   : > { %s968_s6 = scalar_select %p178_p7, %s868_s20, %s180_s27  }
   0xd   : > { %p260_p10 = pnand %p696_p6, %p259_p9 }
   0xe   : > { %p309_p11 = scmp.lt.s32.totalorder (!%p260_p10), %s872_s21, 1  ;;  %s306_s16 = sand.u32 (!%p260_p10), 1, %s864_s19  }
   0xf   : > { %263 = sbr.rel (%p260_p10) target bundleno = 257 (0x101), region = 40  ;;  %s697_s17 = sshll.u32 (!%p260_p10), %s306_s16, 3 }
  0x10   : > { %s308_s29 = scalar_lea.vmem (!%p260_p10), [#allocation3], %s697_s17  ;;  %s544_s11 = scalar_lea.sflag (!%p260_p10), [#allocation4], %s306_s16 }
  0x11   : > { %s558_s7 = sshll.u32 (!%p260_p10), %s308_s29, 4  ;;  %s884_s13 = smov (!%p260_p10), [#allocation3]   ;;  %s559_s7 = int_to_ptr.vmem [resolvable:$true] %s558_s7 }
  0x12   : > { %s804_s12 = scalar_lea.vmem (!%p260_p10), %s559_s7, 128  ;;  %s808_s14 = sshll.u32 (!%p260_p10), %s884_s13, 4  ;;  %s809_s14 = int_to_ptr.vmem [resolvable:$false] %s808_s14 }
  0x13   : > { %p805_p12 = scmp.ne.s32.totalorder (!%p260_p10), %s559_s7, %s804_s12  ;;  %p811_p1 = scmp.lt.s32.totalorder (!%p260_p10), %s559_s7, %s809_s14 }
  0x14   : > { %vm342_vm0 = vcmask 261120   ;;  %v349_v0 = vld [vmem:[%s1058_s1 + $0x18] sm:$0xff]  ;;  %vm446_vm1 = vcmask 31744   ;;  %v882_v1 = vmov 0.0   ;;  %v348_v3 = vld [vmem:[%s1058_s1 + $0x10] sm:$0xff]  ;;  %vm883_vm2 = vmmov 0  }
  0x15   : > { %725 = vmatprep.subr.mxu0 %v882_v1  ;;  %343 = vst.msk [vmem:[#allocation2] sm:$0xff] %vm342_vm0, %v882_v1  ;;  %736 = vmatprep.subr.mxu1 %v882_v1  ;;  %v445_v2 = vld [vmem:[%s1061_s4 + $0x18] sm:$0xff]  ;;  %v444_v4 = vld [vmem:[%s1061_s4 + $0x10] sm:$0xff]  ;;  %s310_s15 = scalar_select %p309_p11, %s872_s21, 1  ;;  %v347_v5 = vld [vmem:[%s1058_s1 + $0x8] sm:$0xff] }
  0x16   : > { %726 = vmatpush3.xpose.msk.msra.mxu0 %vm342_vm0, %v349_v0  ;;  %737 = vmatpush3.xpose.msk.msra.mxu1 %vm446_vm1, %v445_v2  ;;  %v443_v6 = vld [vmem:[%s1061_s4 + $0x8] sm:$0xff]  ;;  %v346_v7 = vld [vmem:[%s1058_s1] sm:$0xff]  ;;  %p806_p13 = pnand %p805_p12, %p955_p4 }
  0x17   : > { %727 = vmatprep.subr.mxu0 %v882_v1  ;;  %738 = vmatprep.subr.mxu1 %v882_v1  ;;  %s698_s27 = sshll.u32 %s310_s15, 3  ;;  %v442_v8 = vld [vmem:[%s1061_s4] sm:$0xff] }
  0x18   : > { %733 = vmatprep.mubr.msk.f32.mxu0 %vm883_vm2, %v882_v1  ;;  %744 = vmatprep.mubr.msk.f32.mxu1 %vm883_vm2, %v882_v1  ;;  %s315_s10 = scalar_lea.vmem %s1057_s0, %s698_s27  ;;  %s331_s15 = scalar_lea.vmem %s1060_s3, %s698_s27  ;;  %v710_v17 = vld [vmem:[%s1059_s2] ss:$0 sm:$0xff] }
  0x19   : > { %v345_v9 = vld [vmem:[%s315_s10] sm:$0xff]  ;;  %s712_s27 = sshll.u32 %s872_s21, 7  ;;  %p807_p0 = pneg %p806_p13 }
  0x1a   : > { %728 = vmatpush3.xpose.msk.msra.mxu0 %vm342_vm0, %v348_v3  ;;  %739 = vmatpush3.xpose.msk.msra.mxu1 %vm446_vm1, %v444_v4  ;;  %v441_v10 = vld [vmem:[%s331_s15] sm:$0xff]  ;;  %s556_s10 = scalar_lea.hbm %s1062_s5, %s712_s27  ;;  %s810_s21 = scalar_lea.vmem %s809_s14, 256 }
  0x1b   : > { %729 = vmatprep.subr.mxu0 %v882_v1  ;;  %740 = vmatprep.subr.mxu1 %v882_v1  ;;  %p812_p2 = scmp.lt.s32.totalorder %s810_s21, %s804_s12 }
  0x1c   : > { %v344_v11 = vld [vmem:[#allocation2] sm:$0xff] }
  0x1d   : > { %p813_p3 = por %p812_p2, %p811_p1 }
  0x1e   : > { %730 = vmatpush3.xpose.msk.msra.mxu0 %vm342_vm0, %v347_v5  ;;  %741 = vmatpush3.xpose.msk.msra.mxu1 %vm446_vm1, %v443_v6 }
  0x1f   : > { %731 = vmatprep.subr.mxu0 %v882_v1  ;;  %742 = vmatprep.subr.mxu1 %v882_v1  ;;  %p814_p5 = pnand %p813_p3, %p807_p0 }
  0x22   : > { %732 = vmatpush3.xpose.msk.msra.mxu0 %vm342_vm0, %v346_v7  ;;  %743 = vmatpush3.xpose.msk.msra.mxu1 %vm446_vm1, %v442_v8 }
  0x25   : > { %734 = vmatmul.mubr.msk.f32.vlgmr.msra.gmra.mxu0 %vm342_vm0, %v345_v9  ;;  %745 = vmatmul.mubr.msk.f32.vlgmr.msra.gmra.mxu1 %vm446_vm1, %v441_v10 }
  0xe5   : > { %v432_v12 = vpop.f32.mrf.mxu0  ;;  %v528_v13 = vpop.f32.mrf.mxu1 }
  0xe6   : > { %v436_v14 = vadd.f32 %v432_v12, %v344_v11 }
  0xe7   : > { %v735_v15 = vpop.f32.mrf.mxu0  ;;  %v746_v16 = vpop.f32.mrf.mxu1 }
  0xe8   : > { %437 = vst.msk [vmem:[#allocation2] sm:$0xff] %vm342_vm0, %v436_v14 }
  0xef   : > { %v532_v18 = vld [vmem:[#allocation2] sm:$0xff] }
  0xf0   : > { %v540_v19 = vadd.f32 %v710_v17, %v532_v18 }
  0xf2   : > { %v541_v20 = vadd.f32 %v540_v19, %v528_v13 }
  0xf4   : > { %542 = vst.msk [vmem:[%s308_s29] sm:$0xff] %vm342_vm0, %v541_v20 }
  0xf5   : > { %817 = shalt.err (!%p814_p5)
}
  0xf6   : > { %s818_s15 = scalar_lea.hbm %s556_s10, 128  ;;  %s822_s24 = scalar_lea.hbm %s1062_s5, 256 }
  0xf7   : > { %p819_p6 = scmp.ne.s32.totalorder %s556_s10, %s818_s15  ;;  %p823_p10 = scmp.lt.s32.totalorder %s556_s10, %s1062_s5 }
  0xf8   : > { %p824_p11 = scmp.lt.s32.totalorder %s822_s24, %s818_s15 }
  0xf9   : > { %p820_p7 = pnand %p819_p6, %p955_p4 }
  0xfa   : > { %p825_p12 = por %p824_p11, %p823_p10 }
  0xfb   : > { %p821_p9 = pneg %p820_p7 }
  0xfd   : > { %p826_p13 = pnand %p825_p12, %p821_p9 }
  0xff   : > { %829 = shalt.err (!%p826_p13)
}
 0x100   : > { %747 = dma.vmem_to_hbm [thread:$0]  (%p955_p4), %s559_s7, 128, %s556_s10, %s544_s11  }
 0x101 PF: > { %p753_p0 = scmp.ge.s32.totalorder %s880_s23, 2  ;;  %s570_s29 = sand.u32 1, %s860_s18  }
 0x102   : > { %s571_s8 = scalar_lea.sflag [#allocation4], %s570_s29 }
 0x103   : > { %p750_p1 = pnand %p753_p0, %p962_p8 }
 0x105   : > { %p751_p2 = pneg %p750_p1 }
 0x107   : > { %855 = dma.done.wait (%p751_p2), %s571_s8, 128  }
 0x108   : > { %857 = vsyncadd (%p751_p2), %s571_s8, 4294967168  ;;  %s18_s23 = sadd.s32 1, %s880_s23   ;;  %s1065_s18 = smov %s864_s19 }
 0x109   : > { %p15_p3 = scmp.ge.s32.totalorder %s18_s23, 4   ;;  %s1066_s19 = smov %s868_s20 }
 0x10a   : > { %s1067_s20 = smov %s968_s6  ;;  %s1068_s21 = smov %s876_s22 }
 0x10b   : > { %s1069_s22 = smov %s1071_s26  ;;  %17 = sbr.rel (!%p15_p3) target bundleno = 4 (0x4), region = 95 }
 0x110   :  { %576 = vsyncpa [#allocation4], 1 }
 0x111   :  { %578 = vsyncpa [#allocation4 + $0x1], 1 }

</bundles_post_ra>
